<compile_context>
chip_gen: v7x
topology: tpu7x:2x2x1
jax: 0.10.0
libtpu: 0.0.40
codegen_flags: <defaults>
</compile_context>

<pallas_src>
import functools

import jax
import jax.numpy as jnp
from jax import lax
from jax.experimental import pallas as pl
from jax.experimental.pallas import tpu as pltpu

EPS = 1e-8  # matches torch.nn.functional.cosine_similarity default eps


def _round_up(n, m):
    return ((n + m - 1) // m) * m


def _pow_keep_on_vpu(x, gamma):
    """x ** gamma; for integer gamma use a multiply chain (VPU), not exp/log (EUP)."""
    g = gamma
    if isinstance(g, float) and g.is_integer():
        g = int(g)
    if isinstance(g, int):
        if g == 0:
            return jnp.ones_like(x)
        if g == 1:
            return x
        result = None
        base = x
        n = g
        while n > 0:
            if n & 1:
                result = base if result is None else result * base
            n >>= 1
            if n:
                base = base * base
        return result
    # TODO(synk): non-integer gamma falls back to pow (exp/log on the EUP).
    return x ** g


def _ppm_kernel(xq_ref, xk_ref, ts_ref, invg_ref, o_ref, acc_ref, *,
                gamma, ew_dtype, mm_dtype):
    # xq_ref  : (1, C, TQ) query pixels                       (matmul dtype)
    # xk_ref  : (1, C, TK) key pixels                         (matmul dtype)
    # ts_ref  : (1, C, TK) conv(x) * key inv-norm^gamma       (matmul dtype)
    # invg_ref: (1, 1, TQ) query-side inverse-norm^gamma      (f32)
    # o_ref   : (1, C, TQ) output tile
    # acc_ref : (C, TQ) f32 accumulator, carried across the key axis.
    kk = pl.program_id(2)

    @pl.when(kk == 0)
    def _init():
        acc_ref[...] = jnp.zeros_like(acc_ref)

    # Similarity numerator: contract the channel axis directly (no transposes).
    w12 = lax.dot_general(
        xq_ref[0], xk_ref[0], (((0,), (0,)), ((), ())),
        preferred_element_type=jnp.float32)                      # (TQ, TK) f32

    # relu(cos)^gamma == inv_q^g * inv_k^g * relu(w12)^g; scales applied outside.
    s = _pow_keep_on_vpu(jnp.maximum(w12.astype(ew_dtype), 0.0), gamma)

    # Propagate: contract the key axis, accumulate in f32.
    acc_ref[...] += lax.dot_general(
        ts_ref[0], s.astype(mm_dtype), (((1,), (1,)), ((), ())),
        preferred_element_type=jnp.float32)                      # (C, TQ)

    @pl.when(kk == pl.num_programs(2) - 1)
    def _finalize():
        o_ref[0] = (acc_ref[...] * invg_ref[0]).astype(o_ref.dtype)


# ----------------------------- tiling / HW plan ------------------------------

def _vmem_capacity_bytes():
    try:
        cap = int(getattr(pltpu.get_tpu_info(), "vmem_capacity_bytes", 0))
        if cap > 0:
            return cap
    except Exception:
        pass
    return 64 * 1024 * 1024  # conservative default: assume v7x-sized VMEM


def _has_bf16_vpu():
    """True on generations with a bf16 VPU (v6e and later); False on <= v5."""
    try:
        kind = jax.devices()[0].device_kind.lower()
    except Exception:
        return False
    if any(old in kind for old in ("v2", "v3", "v4", "v5")):
        return False
    return True


def _lane_tile_candidates(p, cap):
    """Divisors of p that are multiples of 128, descending, capped at `cap`."""
    hi = min(p, cap)
    hi -= hi % 128
    return [c for c in range(hi, 127, -128) if p % c == 0]


def _vmem_estimate_bytes(c, tq, tk, mm_bytes, ew_bytes):
    """Rough per-step working set (double-buffered blocks + live temporaries)."""
    c_mm = _round_up(c, 8 * max(1, 4 // mm_bytes))   # sublane padding (packed dtypes)
    c_f32 = _round_up(c, 8)
    inputs = 2 * (c_mm * tq * mm_bytes               # x query block
                  + 2 * c_mm * tk * mm_bytes         # x key block + scaled-t block
                  + 8 * tq * 4)                      # inv-norm^gamma block
    out = 2 * c_f32 * tq * 4
    acc = c_f32 * tq * 4
    temps = tq * tk * (4 + ew_bytes)                 # w12 (f32) + relu/pow tile
    if ew_bytes != mm_bytes:
        temps += tq * tk * mm_bytes                  # cast feeding the 2nd matmul
    return inputs + out + acc + temps


def _plan_tiles(c, p, mm_bytes, ew_bytes):
    """Generation-aware (TQ, TK, vmem_limit): bigger tiles on 128 MiB parts."""
    vmem_cap = _vmem_capacity_bytes()
    # Scoped limit requested from Mosaic, leaving room for its internal scratch.
    vmem_limit = max(32 * 1024 * 1024,
                     min(vmem_cap - 16 * 1024 * 1024, 100 * 1024 * 1024))
    budget = vmem_limit - 8 * 1024 * 1024            # headroom for compiler temps
    # TQ up to 1024 on 128 MiB parts (v5e/v6e), 256 on 64 MiB parts (v7x).
    tq_cap = 1024 if vmem_cap > 96 * 1024 * 1024 else 256

    tq_cands = _lane_tile_candidates(p, tq_cap)
    tk_cands = _lane_tile_candidates(p, p)
    best = (tq_cands[-1], tk_cands[-1])              # smallest legal tiles
    for tq in tq_cands:
        for tk in tk_cands:
            if (_vmem_estimate_bytes(c, tq, tk, mm_bytes, ew_bytes) <= budget
                    and tq * tk > best[0] * best[1]):
                best = (tq, tk)
    return best[0], best[1], int(vmem_limit)


# --------------------------------- wrapper -----------------------------------

def ppm_forward(x, weight, bias, *, gamma=2, tq=None, tk=None,
                matmul_dtype=jnp.bfloat16, elementwise_dtype=None):
    """x: (B, C, H, W); weight: (C, C) (Conv2d 1x1, out-major); bias: (C,)."""
    B, C, H, W = x.shape
    P = H * W
    x_f32 = x.astype(jnp.float32)

    # NCHW -> (B, C, P): pure reshape, pixels land on the lane axis.
    x_cp = x_f32.reshape(B, C, P)

    # Pad the pixel axis to a multiple of 128 (lane-dense blocks, unmasked vst).
    P_pad = _round_up(P, 128)
    if P_pad != P:
        x_cp = jnp.pad(x_cp, ((0, 0), (0, 0), (0, P_pad - P)))
    # TODO(synk): for C < 8 (sublane) / far below the MXU width, pad C or pack
    # several batch elements per grid step; the toy C=4 config underfills the MXU.

    # ---- Hoisted per-batch work (previously recomputed every query tile) ----
    # Per-pixel inverse-norm^gamma.  (eps clamp is per-norm instead of on the
    # product of norms as in torch.cosine_similarity; identical whenever the
    # pixel norm is >= eps, which is the normal case.)
    w1 = jnp.sum(x_cp * x_cp, axis=1, keepdims=True)              # (B, 1, P_pad)
    inv_g = lax.rsqrt(jnp.maximum(w1, EPS * EPS)) ** gamma        # (B, 1, P_pad)

    # 1x1 conv (tiny: B*C*C*P flops) with the key-side scale folded in once.
    t_cp = jnp.einsum('dc,bcp->bdp', weight, x_cp) + bias[None, :, None]
    ts_cp = (t_cp * inv_g).astype(matmul_dtype)                   # (B, C, P_pad)

    # MXU operands stored in matmul_dtype (bf16 default: half the HBM/DMA bytes
    # and bf16-MXU throughput).  Accumulation is always f32 in the kernel.
    x_mm = x_cp.astype(matmul_dtype)
    inv_g = inv_g.astype(jnp.float32)

    mm_bytes = jnp.dtype(matmul_dtype).itemsize
    if elementwise_dtype is None:
        # relu + gamma chain in bf16 only on chips with a bf16 VPU (v6e+).
        elementwise_dtype = (jnp.bfloat16
                             if (matmul_dtype == jnp.bfloat16 and _has_bf16_vpu())
                             else jnp.float32)
    ew_bytes = jnp.dtype(elementwise_dtype).itemsize

    auto_tq, auto_tk, vmem_limit = _plan_tiles(C, P_pad, mm_bytes, ew_bytes)
    tq = auto_tq if tq is None else tq
    tk = auto_tk if tk is None else tk
    assert P_pad % tq == 0 and (tq % 128 == 0 or tq == P_pad), "bad query tile"
    assert P_pad % tk == 0 and (tk % 128 == 0 or tk == P_pad), "bad key tile"
    n_qt, n_kt = P_pad // tq, P_pad // tk

    kernel = functools.partial(
        _ppm_kernel, gamma=gamma, ew_dtype=elementwise_dtype, mm_dtype=matmul_dtype)

    cost = pl.CostEstimate(
        flops=int(4 * B * P_pad * P_pad * C + 3 * B * P_pad * P_pad),
        transcendentals=0,
        bytes_accessed=int(B * (C * P_pad * mm_bytes * (1 + 2 * n_qt)
                                + P_pad * 4 + C * P_pad * 4)),
    )

    out_cp = pl.pallas_call(
        kernel,
        out_shape=jax.ShapeDtypeStruct((B, C, P_pad), x.dtype),
        grid_spec=pltpu.PrefetchScalarGridSpec(
            num_scalar_prefetch=0,
            grid=(B, n_qt, n_kt),
            in_specs=[
                pl.BlockSpec((1, C, tq), lambda b, q, k: (b, 0, q)),  # x (queries)
                pl.BlockSpec((1, C, tk), lambda b, q, k: (b, 0, k)),  # x (keys)
                pl.BlockSpec((1, C, tk), lambda b, q, k: (b, 0, k)),  # t * inv_k^g
                pl.BlockSpec((1, 1, tq), lambda b, q, k: (b, 0, q)),  # inv_q^g
            ],
            out_specs=pl.BlockSpec((1, C, tq), lambda b, q, k: (b, 0, q)),
            scratch_shapes=[pltpu.VMEM((C, tq), jnp.float32)],
        ),
        compiler_params=pltpu.CompilerParams(
            dimension_semantics=("parallel", "parallel", "arbitrary"),
            vmem_limit_bytes=int(vmem_limit),
        ),
        cost_estimate=cost,
    )(x_mm, x_mm, ts_cp, inv_g)

    return out_cp[:, :, :P].reshape(B, C, H, W)


def ppm_reference(x, weight, bias, *, gamma=2):
    """Pure-JAX reference mirroring the PyTorch forward (for verification)."""
    B, C, H, W = x.shape
    x_pc = jnp.transpose(x, (0, 2, 3, 1)).reshape(B, H * W, C)
    w12 = jnp.einsum('bpc,bqc->bpq', x_pc, x_pc)
    w1 = jnp.sum(x_pc * x_pc, axis=-1)
    denom = jnp.sqrt(jnp.maximum(w1[:, :, None] * w1[:, None, :], EPS * EPS))
    sim = jnp.maximum(w12 / denom, 0.0) ** gamma
    t = jnp.einsum('bpc,dc->bpd', x_pc, weight) + bias[None, None, :]
    out = jnp.einsum('bpq,bqc->bpc', sim, t)
    return jnp.transpose(out.reshape(B, H, W, C), (0, 3, 1, 2))


if __name__ == "__main__":
    key = jax.random.PRNGKey(0)
    k_x, k_w, k_b, k_x2 = jax.random.split(key, 4)

    B, C, H, W = 2, 4, 16, 16
    gamma = 2

    x = jax.random.normal(k_x, (B, C, H, W), dtype=jnp.float32)

    # Deterministic Conv2d(C, C, kernel_size=1) params: weight (C, C), bias (C,)
    fan_in = C  # 1x1 conv
    bound = 1.0 / (fan_in ** 0.5)
    weight = jax.random.uniform(k_w, (C, C), jnp.float32, -bound, bound)
    bias = jax.random.uniform(k_b, (C,), jnp.float32, -bound, bound)

    ref = ppm_reference(x, weight, bias, gamma=gamma)

    # f32 MXU path with explicit small tiles: exercises query tiling AND the
    # key-axis accumulator (tq=tk=128 < P=256).
    out = jax.block_until_ready(
        ppm_forward(x, weight, bias, gamma=gamma, tq=128, tk=128,
                    matmul_dtype=jnp.float32))
    assert out.shape == (B, C, H, W)
    assert jnp.allclose(out, ref, atol=1e-3, rtol=1e-3), "f32 kernel mismatch vs reference"

    # Default path: bf16 MXU operands / f32 accumulation, auto tiles.
    out_bf16 = jax.block_until_ready(ppm_forward(x, weight, bias, gamma=gamma))
    assert jnp.allclose(out_bf16, ref, atol=1e-1, rtol=5e-2), "bf16 kernel mismatch vs reference"

    # Non-128-aligned spatial size (7x7 -> P=49, zero-padded to 128 lanes).
    C2 = 8
    bound2 = 1.0 / (C2 ** 0.5)
    x2 = jax.random.normal(k_x2, (1, C2, 7, 7), dtype=jnp.float32)
    w2 = jax.random.uniform(k_w, (C2, C2), jnp.float32, -bound2, bound2)
    b2 = jax.random.uniform(k_b, (C2,), jnp.float32, -bound2, bound2)
    ref2 = ppm_reference(x2, w2, b2, gamma=gamma)
    out2 = jax.block_until_ready(
        ppm_forward(x2, w2, b2, gamma=gamma, matmul_dtype=jnp.float32))
    assert jnp.allclose(out2, ref2, atol=1e-3, rtol=1e-3), "padded-P kernel mismatch vs reference"

    print("KERNEL_OK")
</pallas_src>

<mosaic_0001>
module attributes {stable_mosaic.version = 11 : i64} {
  func.func @_ppm_kernel(%arg0: i32, %arg1: i32, %arg2: i32, %arg3: memref<1x4x128xf32, #tpu.memory_space<vmem>>, %arg4: memref<1x4x128xf32, #tpu.memory_space<vmem>>, %arg5: memref<1x4x128xf32, #tpu.memory_space<vmem>>, %arg6: memref<1x1x128xf32, #tpu.memory_space<vmem>>, %arg7: memref<1x4x128xf32, #tpu.memory_space<vmem>>, %arg8: memref<4x128xf32, #tpu.memory_space<vmem>>) attributes {dimension_semantics = [#tpu.dimension_semantics<parallel>, #tpu.dimension_semantics<parallel>, #tpu.dimension_semantics<arbitrary>], iteration_bounds = array<i64: 2, 2, 2>, scalar_prefetch = 0 : i64, scratch_operands = 1 : i64, tpu.core_type = #tpu.core_type<tc>, window_params = [{transform_indices = @transform_0, window_bounds = array<i64: 1, 4, 128>}, {transform_indices = @transform_1, window_bounds = array<i64: 1, 4, 128>}, {transform_indices = @transform_2, window_bounds = array<i64: 1, 4, 128>}, {transform_indices = @transform_3, window_bounds = array<i64: 1, 1, 128>}, {transform_indices = @transform_4, window_bounds = array<i64: 1, 4, 128>}]} {
    %c0_i32 = arith.constant 0 : i32
    %0 = arith.cmpi eq, %arg2, %c0_i32 : i32
    %1 = arith.extui %0 : i1 to i32
    %c0_i32_0 = arith.constant 0 : i32
    %2 = arith.cmpi ne, %1, %c0_i32_0 : i32
    scf.if %2 {
      %cst_16 = arith.constant 0.000000e+00 : f32
      %20 = vector.broadcast %cst_16 : f32 to vector<4x128xf32>
      %c0_17 = arith.constant 0 : index
      %c0_18 = arith.constant 0 : index
      %21 = vector.load %arg8[%c0_17, %c0_18] : memref<4x128xf32, #tpu.memory_space<vmem>>, vector<4x128xf32>
      tpu.vector_store %arg8[%c0_17, %c0_18], %20 {strides = array<i32>} : memref<4x128xf32, #tpu.memory_space<vmem>>, vector<4x128xf32>,
    } else {
    }
    %c0 = arith.constant 0 : index
    %c0_1 = arith.constant 0 : index
    %c0_2 = arith.constant 0 : index
    %3 = vector.load %arg3[%c0, %c0_1, %c0_2] : memref<1x4x128xf32, #tpu.memory_space<vmem>>, vector<1x4x128xf32>
    %4 = vector.shape_cast %3 : vector<1x4x128xf32> to vector<4x128xf32>
    %c0_3 = arith.constant 0 : index
    %c0_4 = arith.constant 0 : index
    %c0_5 = arith.constant 0 : index
    %5 = vector.load %arg4[%c0_3, %c0_4, %c0_5] : memref<1x4x128xf32, #tpu.memory_space<vmem>>, vector<1x4x128xf32>
    %6 = vector.shape_cast %5 : vector<1x4x128xf32> to vector<4x128xf32>
    %cst = arith.constant dense<0.000000e+00> : vector<128x128xf32>
    %7 = tpu.matmul %4, %6, %cst {dimension_numbers = #tpu.dot_dimension_numbers<[0], [0], [1], [1], [0, 1, 1, 1], [], []>} : vector<4x128xf32>, vector<4x128xf32>, vector<128x128xf32> -> vector<128x128xf32>
    %cst_6 = arith.constant 0.000000e+00 : f32
    %8 = vector.broadcast %cst_6 : f32 to vector<128x128xf32>
    %9 = arith.maximumf %7, %8 : vector<128x128xf32>
    %10 = arith.mulf %9, %9 : vector<128x128xf32>
    %c0_7 = arith.constant 0 : index
    %c0_8 = arith.constant 0 : index
    %11 = vector.load %arg8[%c0_7, %c0_8] : memref<4x128xf32, #tpu.memory_space<vmem>>, vector<4x128xf32>
    %c0_9 = arith.constant 0 : index
    %c0_10 = arith.constant 0 : index
    %c0_11 = arith.constant 0 : index
    %12 = vector.load %arg5[%c0_9, %c0_10, %c0_11] : memref<1x4x128xf32, #tpu.memory_space<vmem>>, vector<1x4x128xf32>
    %13 = vector.shape_cast %12 : vector<1x4x128xf32> to vector<4x128xf32>
    %cst_12 = arith.constant dense<0.000000e+00> : vector<4x128xf32>
    %14 = tpu.matmul %13, %10, %cst_12 {dimension_numbers = #tpu.dot_dimension_numbers<[1], [1], [0], [0], [0, 0, 1, 0], [], []>} : vector<4x128xf32>, vector<128x128xf32>, vector<4x128xf32> -> vector<4x128xf32>
    %15 = arith.addf %11, %14 : vector<4x128xf32>
    %c0_13 = arith.constant 0 : index
    %c0_14 = arith.constant 0 : index
    %16 = vector.load %arg8[%c0_13, %c0_14] : memref<4x128xf32, #tpu.memory_space<vmem>>, vector<4x128xf32>
    tpu.vector_store %arg8[%c0_13, %c0_14], %15 {strides = array<i32>} : memref<4x128xf32, #tpu.memory_space<vmem>>, vector<4x128xf32>,
    %c1_i32 = arith.constant 1 : i32
    %17 = arith.cmpi eq, %arg2, %c1_i32 : i32
    %18 = arith.extui %17 : i1 to i32
    %c0_i32_15 = arith.constant 0 : i32
    %19 = arith.cmpi ne, %18, %c0_i32_15 : i32
    scf.if %19 {
      %c0_16 = arith.constant 0 : index
      %c0_17 = arith.constant 0 : index
      %20 = vector.load %arg8[%c0_16, %c0_17] : memref<4x128xf32, #tpu.memory_space<vmem>>, vector<4x128xf32>
      %c0_18 = arith.constant 0 : index
      %c0_19 = arith.constant 0 : index
      %c0_20 = arith.constant 0 : index
      %21 = vector.load %arg6[%c0_18, %c0_19, %c0_20] : memref<1x1x128xf32, #tpu.memory_space<vmem>>, vector<1x1x128xf32>
      %22 = vector.shape_cast %21 : vector<1x1x128xf32> to vector<1x128xf32>
      %23 = vector.broadcast %22 : vector<1x128xf32> to vector<4x128xf32>
      %24 = arith.mulf %20, %23 : vector<4x128xf32>
      %c0_21 = arith.constant 0 : index
      %c0_22 = arith.constant 0 : index
      %c0_23 = arith.constant 0 : index
      %25 = vector.load %arg7[%c0_21, %c0_22, %c0_23] : memref<1x4x128xf32, #tpu.memory_space<vmem>>, vector<1x4x128xf32>
      %26 = vector.shape_cast %25 : vector<1x4x128xf32> to vector<4x128xf32>
      %27 = vector.shape_cast %24 : vector<4x128xf32> to vector<1x4x128xf32>
      tpu.vector_store %arg7[%c0_21, %c0_22, %c0_23], %27 {strides = array<i32>} : memref<1x4x128xf32, #tpu.memory_space<vmem>>, vector<1x4x128xf32>,
    } else {
    }
    return
  }
  func.func @transform_0(%arg0: i32, %arg1: i32, %arg2: i32) -> (i32, i32, i32) {
    %c0_i32 = arith.constant 0 : i32
    %c0_i32_0 = arith.constant 0 : i32
    return %arg0, %c0_i32, %arg1 : i32, i32, i32
  }
  func.func @transform_1(%arg0: i32, %arg1: i32, %arg2: i32) -> (i32, i32, i32) {
    %c0_i32 = arith.constant 0 : i32
    %c0_i32_0 = arith.constant 0 : i32
    return %arg0, %c0_i32, %arg2 : i32, i32, i32
  }
  func.func @transform_2(%arg0: i32, %arg1: i32, %arg2: i32) -> (i32, i32, i32) {
    %c0_i32 = arith.constant 0 : i32
    %c0_i32_0 = arith.constant 0 : i32
    return %arg0, %c0_i32, %arg2 : i32, i32, i32
  }
  func.func @transform_3(%arg0: i32, %arg1: i32, %arg2: i32) -> (i32, i32, i32) {
    %c0_i32 = arith.constant 0 : i32
    %c0_i32_0 = arith.constant 0 : i32
    return %arg0, %c0_i32, %arg1 : i32, i32, i32
  }
  func.func @transform_4(%arg0: i32, %arg1: i32, %arg2: i32) -> (i32, i32, i32) {
    %c0_i32 = arith.constant 0 : i32
    %c0_i32_0 = arith.constant 0 : i32
    return %arg0, %c0_i32, %arg1 : i32, i32, i32
  }
}

</mosaic_0001>

<bundles_post_ra>
// kernel: tpu_custom_call.1
= control target key start
LH: loop header
LB: loop body
LE: loop exit
PB: predicated region body
PF: predicated region fallthrough
CT: control target
= control target key end

     0   :  { %s1867_s0 = inlined_call_operand.hbm [shape: f32[2,4,256], index: 0, kind: input, shape index: {}]   ;;  %s1868_s1 = inlined_call_operand.hbm [shape: f32[2,4,256], index: 1, kind: input, shape index: {}]   ;;  %s1869_s2 = inlined_call_operand.hbm [shape: f32[2,4,256], index: 2, kind: input, shape index: {}]   ;;  %s1870_s3 = inlined_call_operand.vmem [shape: f32[2,1,256], index: 3, kind: input, shape index: {}]   ;;  %s1871_s4 = inlined_call_operand.hbm [shape: f32[2,4,256], index: 4, kind: output, shape index: {}]  }
   0x1   :  { %1901 = sst [smem:[#allocation29_spill]] %s1868_s1 }
   0x2   :  { %1902 = sst [smem:[#allocation30_spill]] %s1870_s3 }
   0x3   :  { %1903 = sst [smem:[#allocation31_spill]] %s1871_s4 }
   0x4   :  { %9 = vsyncpa [#allocation4], 0 }
   0x5   :  { %11 = vsyncpa [#allocation4 + $0x1], 0 }
   0x6   :  { %12 = vsyncpa [#allocation7], 0 }
   0x7   :  { %14 = vsyncpa [#allocation7 + $0x1], 0 }
   0x8   :  { %15 = vsyncpa [#allocation5], 0 }
   0x9   :  { %17 = vsyncpa [#allocation5 + $0x1], 0  ;;  %s1433_s15 = smov 0   ;;  %s1435_s16 = smov 0  }
   0xa   :  { %s1437_s17 = smov 0   ;;  %s1439_s18 = smov 0  }
   0xb   :  { %s1441_s19 = smov 0   ;;  %s1443_s20 = smov 0  }
   0xc   :  { %s1445_s21 = smov 0   ;;  %s1447_s22 = smov 0  }
   0xd   :  { %s1449_s23 = smov 0   ;;  %s1451_s24 = smov 0  }
   0xe   :  { %s1453_s25 = smov 0   ;;  %s1455_s26 = smov 0  }
   0xf   :  { %s1457_s27 = smov 0  }
  0x10 LB: > { %1904 = sst [smem:[#allocation13_spill]] %s1354_s16  ;;  %s1497_s28 = sadd.s32 4294967295, %s1398_s27   ;;  %s1398_s27 = sphi %s1457_s27, %s23_s27   ;;  %s1394_s26 = sphi %s1455_s26, %s1982_s26   ;;  %s1390_s25 = sphi %s1453_s25, %s1981_s25   ;;  %s1386_s24 = sphi %s1451_s24, %s1980_s24   ;;  %s1382_s23 = sphi %s1449_s23, %s1979_s23   ;;  %s1378_s22 = sphi %s1447_s22, %s1978_s22   ;;  %s1374_s21 = sphi %s1445_s21, %s1977_s21   ;;  %s1370_s20 = sphi %s1443_s20, %s1976_s20   ;;  %s1366_s19 = sphi %s1441_s19, %s1975_s19   ;;  %s1362_s18 = sphi %s1439_s18, %s1969_s18   ;;  %s1358_s17 = sphi %s1437_s17, %s1974_s17   ;;  %s1354_s16 = sphi %s1435_s16, %s1973_s16   ;;  %s1350_s15 = sphi %s1433_s15, %s1968_s15  }
  0x11   : > { %1905 = sst [smem:[#allocation14_spill]] %s1362_s18  ;;  %s35_s29 = sadd.s32 1, %s1386_s24 }
  0x12   : > { %1906 = sst [smem:[#allocation15_spill]] %s1366_s19  ;;  %p1500_p0 = scmp.ge.s32.totalorder %s35_s29, 2 }
  0x13   : > { %1907 = sst [smem:[#allocation16_spill]] %s1374_s21  ;;  %p1878_p1 = scmp.eq.s32.totalorder %s1398_s27, 0 }
  0x14   : > { %1908 = sst [smem:[#allocation17_spill]] %s1378_s22  ;;  %p1877_p2 = scmp.eq.s32.totalorder %s1497_s28, 0 }
  0x15   : > { %1909 = sst [smem:[#allocation18_spill]] %s1382_s23  ;;  %s1984_s29 = smov (%p1500_p0, %s35_s29), 0 }
  0x16   : > { %1910 = sst [smem:[#allocation19_spill]] %s1497_s28  ;;  %p86_p3 = scmp.ne.s32.totalorder %s1358_s17, %s1354_s16 }
  0x17   : > { %p92_p4 = scmp.ne.s32.totalorder %s1354_s16, %s1350_s15  ;;  %p1876_p7 = scmp.lt.s32.totalorder %s1398_s27, 8 }
  0x18   : > { %p1517_p5 = por %p86_p3, %p1878_p1  ;;  %s1873_s9 = sshll.u32 %s1394_s26, 1 }
  0x19   : > { %p1523_p6 = por %p92_p4, %p1877_p2  ;;  %s220_s10 = sand.u32 1, %s1398_s27  }
  0x1a   : > { %s222_s11 = sand.u32 1, %s1358_s17   ;;  %s1536_s13 = sadd.s32 %s1386_s24, %s1873_s9 }
  0x1b   : > { %s1913_s8 = scalar_select %p1523_p6, 1, 0 }
  0x1c   : > { %s1531_s12 = sshll.u32 %s222_s11, 2  ;;  %s1874_s14 = sshll.u32 %s1536_s13, 6 }
  0x1d   : > { %1914 = sst [smem:[#allocation20_spill]] %s1913_s8  ;;  %s1915_s1 = sld [smem:[#allocation29_spill]] }
  0x1e   : > { %s224_s4 = scalar_lea.vmem [#allocation6], %s1531_s12  ;;  %p1553_p8 = pnand %p1876_p7, %p1517_p5 }
  0x1f   : > { %s233_s11 = sshll.u32 %s224_s4, 4  ;;  %s1560_s6 = scalar_lea.sflag [#allocation7], %s220_s10  ;;  %s1547_s11 = int_to_ptr.vmem [resolvable:$true] %s233_s11 }
  0x20   : > { %s1916_s9 = scalar_select %p1553_p8, 1, 0 }
  0x21   : > { %1918 = sst [smem:[#allocation22_spill]] %s1560_s6  ;;  %p1898_p11 = pneg %p1553_p8 }
  0x22   : > { %1917 = sst [smem:[#allocation21_spill]] %s1916_s9 }
  0x23   : > { %s1544_s5 = scalar_lea.hbm %s1915_s1, %s1874_s14  ;;  %s1171_s14 = scalar_lea.hbm %s1915_s1, 256 }
  0x24   : > { %s1166_s15 = scalar_lea.hbm %s1544_s5, 64  ;;  %p1172_p3 = scmp.lt.u32.totalorder %s1544_s5, %s1915_s1 }
  0x25   : > { %p1167_p10 = scmp.ne.s32.totalorder %s1544_s5, %s1166_s15  ;;  %p1173_p4 = scmp.lt.u32.totalorder %s1171_s14, %s1166_s15 }
  0x26   : > { %p1175_p7 = scmp.lt.u32.totalorder %s1166_s15, %s1544_s5 }
  0x27   : > { %p1169_p12 = pnand %p1898_p11, %p1167_p10  ;;  %p1174_p5 = por %p1173_p4, %p1172_p3 }
  0x29   : > { %p1170_p13 = pneg %p1169_p12  ;;  %p1176_p2 = por %p1175_p7, %p1174_p5 }
  0x2b   : > { %p1177_p1 = pnand %p1176_p2, %p1170_p13 }
  0x2d   : > { %1180 = shalt.err (!%p1177_p1)
}
  0x2e   : > { %s1181_s10 = scalar_lea.vmem %s1547_s11, 64  ;;  %s1400_s4 = smov [#allocation6]  }
  0x2f   : > { %p1182_p10 = scmp.ne.s32.totalorder %s1547_s11, %s1181_s10  ;;  %s1186_s7 = sshll.u32 %s1400_s4, 4  ;;  %s1187_s7 = int_to_ptr.vmem [resolvable:$false] %s1186_s7 }
  0x30   : > { %s1188_s3 = scalar_lea.vmem %s1187_s7, 128  ;;  %p1189_p6 = scmp.lt.s32.totalorder %s1547_s11, %s1187_s7 }
  0x31   : > { %p1184_p12 = pnand %p1182_p10, %p1898_p11  ;;  %p1190_p3 = scmp.lt.s32.totalorder %s1188_s3, %s1181_s10 }
  0x33   : > { %p1185_p9 = pneg %p1184_p12  ;;  %p1191_p4 = por %p1190_p3, %p1189_p6 }
  0x35   : > { %p1192_p7 = pnand %p1191_p4, %p1185_p9 }
  0x37   : > { %1195 = shalt.err (!%p1192_p7)
}
  0x38   : > { %1048 = dma.hbm_to_vmem [thread:$0]  (!%p1553_p8), %s1544_s5, 64, %s1547_s11, %s1560_s6  }
  0x39   : > { %p268_p1 = scmp.lt.s32.totalorder %s1398_s27, 9  ;;  %p1919_p2 = scmp.ge.s32.totalorder %s1398_s27, 1 }
  0x3a   : > { %s872_s14 = sadd.s32 4294967294, %s1398_s27   ;;  %s38_s15 = sadd.s32 1, %s1390_s25 }
  0x3b   : > { %p1591_p6 = pnand %p1919_p2, %p268_p1  ;;  %s1986_s15 = smov (!%p1500_p0, %s38_s15), %s1390_s25 }
  0x3c   : > { %s51_s10 = sadd.s32 1, %s1370_s20  ;;  %p58_p9 = scmp.ne.s32.totalorder %s1370_s20, %s1366_s19 }
  0x3d   : > { %s1920_s22 = scalar_select %p1591_p6, 1, 0 }
  0x3e   : > { %p40_p13 = scmp.ge.s32.totalorder %s1986_s15, 2  ;;  %p64_p5 = scmp.ne.s32.totalorder %s1366_s19, %s1362_s18 }
  0x3f   : > { %1921 = sst [smem:[#allocation23_spill]] %s1920_s22  ;;  %p1922_p10 = scmp.eq.s32.totalorder %s1398_s27, 0 }
  0x40   : > { %p174_p3 = scmp.eq.s32.totalorder %s1497_s28, 7  ;;  %s1988_s15 = smov (%p40_p13, %s1986_s15), 0 }
  0x41   : > { %p1607_p12 = por %p1922_p10, %p58_p9  ;;  %1924 = sst [smem:[#allocation24_spill]] %s1988_s15 }
  0x42   : > { %s1925_s11 = sadd.s32 1, %s1394_s26  ;;  %s47_s30 = ssub.s32 %s1390_s25, %s1988_s15 }
  0x43   : > { %s1990_s11 = smov (!%p40_p13, %s1925_s11), %s1394_s26  ;;  %p1926_p0 = scmp.eq.s32.totalorder %s1497_s28, 0 }
  0x44   : > { %p44_p7 = scmp.ge.s32.totalorder %s1990_s11, 2  ;;  %p1625_p1 = por %p174_p3, %p58_p9 }
  0x45   : > { %p1621_p4 = por %p1926_p0, %p64_p5  ;;  %p180_p2 = scmp.eq.s32.totalorder %s872_s14, 7 }
  0x46   : > { %s1929_s7 = scalar_select %p1625_p1, 1, 0 }
  0x47   : > { %s1927_s4 = scalar_select %p1621_p4, 1, 0 }
  0x48   : > { %1930 = sst [smem:[#allocation26_spill]] %s1929_s7  ;;  %s200_s3 = sand.u32 1, %s1370_s20  }
  0x49   : > { %1928 = sst [smem:[#allocation25_spill]] %s1927_s4  ;;  %s1992_s11 = smov (%p44_p7, %s1990_s11), 0 }
  0x4a   : > { %1931 = sst [smem:[#allocation27_spill]] %s1992_s11  ;;  %p1632_p13 = por %p180_p2, %p64_p5 }
  0x4b   : > { %s46_s1 = ssub.s32 %s1394_s26, %s1992_s11  ;;  %s875_s15 = sshll.u32 %s200_s3, 2 }
  0x4c   : > { %s1932_s21 = scalar_select %p1632_p13, 1, 0 }
  0x4d   : > { %s48_s18 = sor.u32 %s47_s30, %s46_s1  ;;  %s1934_s23 = ssub.s32 %s1386_s24, %s1984_s29 }
  0x4e   : > { %1933 = sst [smem:[#allocation28_spill]] %s1932_s21  ;;  %s76_s8 = sor.u32 %s1934_s23, %s46_s1 }
  0x4f   : > { %p49_p9 = scmp.eq.s32.totalorder %s48_s18, 0  ;;  %p77_p10 = scmp.eq.s32.totalorder %s76_s8, 0 }
  0x50   : > { %s1935_s14 = sshll.u32 %s1394_s26, 1  ;;  %s1936_s28 = sadd.s32 1, %s1358_s17 }
  0x51   : > { %s209_s7 = sadd.s32 %s1390_s25, %s1935_s14  ;;  %s204_s22 = scalar_lea.vmem [#allocation3], %s875_s15 }
  0x52   : > { %s1645_s16 = scalar_select %p49_p9, %s1370_s20, %s51_s10  }
  0x53   : > { %s1650_s4 = scalar_select %p77_p10, %s1358_s17, %s1936_s28  }
  0x54   : > { %s877_s19 = sshll.u32 %s209_s7, 6  ;;  %s213_s6 = sshll.u32 %s204_s22, 4  ;;  %s1657_s6 = int_to_ptr.vmem [resolvable:$true] %s213_s6 }
  0x55   : > { %s1655_s11 = scalar_lea.hbm %s1867_s0, %s877_s19  ;;  %p1937_p5 = scmp.lt.s32.totalorder %s1398_s27, 8 }
  0x56   : > { %s244_s18 = scalar_lea.vmem [#allocation8], %s1531_s12  ;;  %s1939_s28 = sshll.u32 %s1536_s13, 6 }
  0x57   : > { %p1663_p3 = pnand %p1937_p5, %p1607_p12  ;;  %s253_s23 = sshll.u32 %s244_s18, 4  ;;  %s1675_s23 = int_to_ptr.vmem [resolvable:$true] %s253_s23 }
  0x58   : > { %s1673_s8 = scalar_lea.hbm %s1869_s2, %s1939_s28  ;;  %s201_s9 = scalar_lea.sflag [#allocation4], %s200_s3 }
  0x59   : > { %s1196_s22 = scalar_lea.hbm %s1655_s11, 64  ;;  %p1198_p12 = pneg %p1663_p3 }
  0x5a   : > { %p1197_p0 = scmp.ne.s32.totalorder %s1655_s11, %s1196_s22  ;;  %s1201_s13 = scalar_lea.hbm %s1867_s0, 256 }
  0x5b   : > { %p1202_p9 = scmp.lt.u32.totalorder %s1655_s11, %s1867_s0  ;;  %p1203_p10 = scmp.lt.u32.totalorder %s1201_s13, %s1196_s22 }
  0x5c   : > { %p1199_p7 = pnand %p1198_p12, %p1197_p0  ;;  %p1205_p11 = scmp.lt.u32.totalorder %s1196_s22, %s1655_s11 }
  0x5d   : > { %p1204_p5 = por %p1203_p10, %p1202_p9 }
  0x5e   : > { %p1200_p2 = pneg %p1199_p7 }
  0x5f   : > { %p1206_p13 = por %p1205_p11, %p1204_p5 }
  0x61   : > { %p1207_p1 = pnand %p1206_p13, %p1200_p2 }
  0x63   : > { %1210 = shalt.err (!%p1207_p1)
}
  0x64   : > { %s1211_s30 = scalar_lea.vmem %s1657_s6, 64  ;;  %s1401_s7 = smov [#allocation3]  }
  0x65   : > { %p1212_p0 = scmp.ne.s32.totalorder %s1657_s6, %s1211_s30  ;;  %s1216_s3 = sshll.u32 %s1401_s7, 4  ;;  %s1217_s3 = int_to_ptr.vmem [resolvable:$false] %s1216_s3 }
  0x66   : > { %s1218_s14 = scalar_lea.vmem %s1217_s3, 128  ;;  %p1219_p6 = scmp.lt.s32.totalorder %s1657_s6, %s1217_s3 }
  0x67   : > { %p1214_p7 = pnand %p1212_p0, %p1198_p12  ;;  %p1220_p9 = scmp.lt.s32.totalorder %s1218_s14, %s1211_s30 }
  0x69   : > { %p1215_p4 = pneg %p1214_p7  ;;  %p1221_p10 = por %p1220_p9, %p1219_p6 }
  0x6b   : > { %p1222_p11 = pnand %p1221_p10, %p1215_p4 }
  0x6d   : > { %1225 = shalt.err (!%p1222_p11)
}
  0x6e   : > { %1045 = dma.hbm_to_vmem [thread:$0]  (!%p1663_p3), %s1655_s11, 64, %s1657_s6, %s201_s9  }
  0x6f   : > { %s1226_s28 = scalar_lea.hbm %s1673_s8, 64  ;;  %p1941_p13 = pneg %p1553_p8 }
  0x70   : > { %p1227_p1 = scmp.ne.s32.totalorder %s1673_s8, %s1226_s28  ;;  %s1231_s22 = scalar_lea.hbm %s1869_s2, 256 }
  0x71   : > { %p1232_p6 = scmp.lt.u32.totalorder %s1673_s8, %s1869_s2  ;;  %p1233_p4 = scmp.lt.u32.totalorder %s1231_s22, %s1226_s28 }
  0x72   : > { %p1229_p12 = pnand %p1227_p1, %p1941_p13  ;;  %p1235_p0 = scmp.lt.u32.totalorder %s1226_s28, %s1673_s8 }
  0x73   : > { %p1234_p5 = por %p1233_p4, %p1232_p6 }
  0x74   : > { %p1230_p2 = pneg %p1229_p12 }
  0x75   : > { %p1236_p7 = por %p1235_p0, %p1234_p5 }
  0x77   : > { %p1237_p9 = pnand %p1236_p7, %p1230_p2 }
  0x79   : > { %1240 = shalt.err (!%p1237_p9)
}
  0x7a   : > { %s1241_s6 = scalar_lea.vmem %s1675_s23, 64  ;;  %p1942_p10 = pmov %p1941_p13 }
  0x7b   : > { %p1242_p3 = scmp.ne.s32.totalorder %s1675_s23, %s1241_s6  ;;  %s1402_s11 = smov [#allocation8]  }
  0x7c   : > { %s1246_s9 = sshll.u32 %s1402_s11, 4  ;;  %s1247_s9 = int_to_ptr.vmem [resolvable:$false] %s1246_s9 }
  0x7d   : > { %p1244_p11 = pnand %p1242_p3, %p1942_p10  ;;  %s1248_s12 = scalar_lea.vmem %s1247_s9, 128 }
  0x7e   : > { %p1249_p13 = scmp.lt.s32.totalorder %s1675_s23, %s1247_s9  ;;  %p1250_p12 = scmp.lt.s32.totalorder %s1248_s12, %s1241_s6 }
  0x7f   : > { %p1245_p1 = pneg %p1244_p11 }
  0x80   : > { %p1251_p6 = por %p1250_p12, %p1249_p13 }
  0x82   : > { %p1252_p4 = pnand %p1251_p6, %p1245_p1 }
  0x84   : > { %1255 = shalt.err (!%p1252_p4)
}
  0x85   : > { %s1943_s13 = sld [smem:[#allocation22_spill]]  ;;  %s1944_s10 = sld [smem:[#allocation23_spill]] }
  0x8b   : > { %1051 = dma.hbm_to_vmem [thread:$0]  (!%p1553_p8), %s1673_s8, 64, %s1675_s23, %s1943_s13  }
  0x8c   : > { %p1945_p2 = scmp.ne.s32.totalorder %s1944_s10, 0 }
  0x8d   : > { %s1946_s5 = sld [smem:[#allocation15_spill]] (!%p1945_p2)  ;;  %s1947_s30 = sld [smem:[#allocation25_spill]] (!%p1945_p2) }
  0x8e   : > { %272 = sbr.rel (%p1945_p2) target bundleno = 849 (0x351), region = 36 }
  0x93   : > { %s1729_s7 = sand.u32 (!%p1945_p2), 1, %s1946_s5   ;;  %p1948_p5 = scmp.ne.s32.totalorder (!%p1945_p2), %s1947_s30, 0 }
  0x94   : > { %s885_s3 = sshll.u32 (!%p1945_p2), %s1729_s7, 2  ;;  %s275_s14 = scalar_lea.sflag (!%p1945_p2), [#allocation4], %s1729_s7 }
  0x95   : > { %s278_s28 = scalar_lea.vmem [#allocation3], %s885_s3 }
  0x96   : > { %1337 = dma.done.wait (%p1948_p5), %s275_s14, 64  }
  0x97   : > { %1339 = vsyncadd (%p1948_p5), %s275_s14, 4294967232  ;;  %s1949_s18 = sld [smem:[#allocation19_spill]]  ;;  %s1951_s23 = sld [smem:[#allocation20_spill]] }
  0x98   : > { %s1950_s21 = sld [smem:[#allocation13_spill]] }
  0x9d   : > { %s283_s8 = sand.u32 1, %s1949_s18   ;;  %p1952_p8 = scmp.ne.s32.totalorder %s1951_s23, 0 }
  0x9e   : > { %s285_s19 = sand.u32 1, %s1950_s21   ;;  %s284_s15 = scalar_lea.sflag [#allocation7], %s283_s8 }
  0x9f   : > { %s1739_s22 = sshll.u32 %s285_s19, 2 }
  0xa0   : > { %s287_s1 = scalar_lea.vmem [#allocation6], %s1739_s22 }
  0xa1   : > { %1341 = dma.done.wait (%p1952_p8), %s284_s15, 128  }
  0xa2   : > { %1343 = vsyncadd (%p1952_p8), %s284_s15, 4294967168  ;;  %s1953_s6 = sld [smem:[#allocation18_spill]]  ;;  %s1954_s11 = sld [smem:[#allocation17_spill]] }
  0xa3   : > { %s1955_s5 = sld [smem:[#allocation30_spill]]  ;;  %s296_s14 = scalar_lea.vmem [#allocation8], %s1739_s22 }
  0xa4   : > { %s1757_s18 = scalar_lea.vmem [#allocation9], %s885_s3  ;;  %s1956_s21 = sld [smem:[#allocation16_spill]] }
  0xa8   : > { %p338_p0 = scmp.lt.s32.totalorder %s1953_s6, 1  ;;  %p340_p7 = scmp.lt.s32.totalorder %s1954_s11, 1 }
  0xaa   : > { %s1994_s6 = smov (!%p338_p0, %s1953_s6), 1  ;;  %s1996_s11 = smov (!%p340_p7, %s1954_s11), 1 }
  0xab   : > { %s889_s9 = sshll.u32 %s1994_s6, 1  ;;  %p890_p9 = scmp.ne.s32.totalorder %s1956_s21, 0 }
  0xac   : > { %s1750_s12 = sadd.s32 %s889_s9, %s1996_s11  ;;  %v1403_v0 = vmov (!%p890_p9), 0.0  }
  0xad   : > { %s344_s30 = scalar_lea.vmem %s1955_s5, %s1750_s12  ;;  %348 = sbr.rel (%p890_p9) target bundleno = 180 (0xb4), region = 52  ;;  %349 = vst [vmem:[#allocation2] sm:$0xf] (!%p890_p9), %v1403_v0 }
  0xb4 PF: > { %v350_v1 = vld [vmem:[%s278_s28] sm:$0xf]  ;;  %v351_v2 = vld [vmem:[%s287_s1] sm:$0xf]  ;;  %vm433_vm0 = vcmask 1043456   ;;  %vm384_vm1 = vcmask 31744  }
  0xb5   : > { %352 = vxpose.xlu0.b32.start.end [1/1] (short) %v350_v1, 128  ;;  %949 = vmatprep.subr.msk.mxu0 %vm433_vm0, %v351_v2  ;;  %v1404_v19 = vmov 0.0|0.0   ;;  %vm1405_vm2 = vmmov 0   ;;  %v1406_v20 = vmov 0.0   ;;  %s1957_s3 = sld [smem:[#allocation16_spill]] }
  0xb6   : > { %950 = vmatpush3.msk.msra.mxu0 %vm433_vm0, %v351_v2  ;;  %1010 = vmatprep.subr.bf16.mxu1 %v1404_v19 }
  0xb7   : > { %1007 = vmatprep.mubr.msk.f32.mxu1 %vm1405_vm2, %v1406_v20 }
  0xbb   : > { %p908_p3 = scmp.ne.s32.totalorder %s1957_s3, 1 }
 0x135   : > { %v368_v3 = vpop.trf.xlu0 }
 0x136   : > { %951 = vmatprep.mubr.msk.f32.mxu0 %vm384_vm1, %v368_v3 }
 0x139   : > { %v369_v4 = vpop.trf.xlu0 }
 0x13a   : > { %952 = vmatmul.mubr.msk.f32.vlgmr.msra.gmra.mrb[0].mxu0 %vm384_vm1, %v369_v4 }
 0x13d   : > { %v370_v5 = vpop.trf.xlu0 }
 0x13e   : > { %954 = vmatprep.mubr.msk.f32.mxu0 %vm384_vm1, %v370_v5 }
 0x141   : > { %v371_v6 = vpop.trf.xlu0 }
 0x142   : > { %955 = vmatmul.mubr.msk.f32.gmra.mrb[2].mxu0 %vm384_vm1, %v371_v6 }
 0x145   : > { %v372_v7 = vpop.trf.xlu0 }
 0x146   : > { %957 = vmatprep.mubr.msk.f32.mxu0 %vm384_vm1, %v372_v7 }
 0x149   : > { %v373_v8 = vpop.trf.xlu0 }
 0x14a   : > { %958 = vmatmul.mubr.msk.f32.gmra.mrb[4].mxu0 %vm384_vm1, %v373_v8 }
 0x14d   : > { %v374_v9 = vpop.trf.xlu0 }
 0x14e   : > { %960 = vmatprep.mubr.msk.f32.mxu0 %vm384_vm1, %v374_v9 }
 0x151   : > { %v375_v10 = vpop.trf.xlu0 }
 0x152   : > { %961 = vmatmul.mubr.msk.f32.gmra.mrb[6].mxu0 %vm384_vm1, %v375_v10 }
 0x155   : > { %v376_v11 = vpop.trf.xlu0 }
 0x156   : > { %963 = vmatprep.mubr.msk.f32.mxu0 %vm384_vm1, %v376_v11 }
 0x159   : > { %v377_v12 = vpop.trf.xlu0 }
 0x15a   : > { %964 = vmatmul.mubr.msk.f32.gmra.mrb[8].mxu0 %vm384_vm1, %v377_v12 }
 0x15d   : > { %v378_v13 = vpop.trf.xlu0 }
 0x15e   : > { %966 = vmatprep.mubr.msk.f32.mxu0 %vm384_vm1, %v378_v13  ;;  %v615_v13 = vld [vmem:[%s296_s14] sm:$0xf] }
 0x161   : > { %v379_v14 = vpop.trf.xlu0 }
 0x162   : > { %967 = vmatmul.mubr.msk.f32.gmra.mrb[10].mxu0 %vm384_vm1, %v379_v14  ;;  %v614_v14 = vld [vmem:[#allocation2] sm:$0xf] }
 0x165   : > { %v380_v15 = vpop.trf.xlu0 }
 0x166   : > { %969 = vmatprep.mubr.msk.f32.mxu0 %vm384_vm1, %v380_v15 }
 0x169   : > { %v381_v16 = vpop.trf.xlu0 }
 0x16a   : > { %970 = vmatmul.mubr.msk.f32.gmra.mrb[12].mxu0 %vm384_vm1, %v381_v16 }
 0x16d   : > { %v382_v17 = vpop.trf.xlu0 }
 0x16e   : > { %972 = vmatprep.mubr.msk.f32.mxu0 %vm384_vm1, %v382_v17 }
 0x171   : > { %v383_v18 = vpop.trf.xlu0 }
 0x172   : > { %973 = vmatmul.mubr.msk.f32.gmra.mrb[14].mxu0 %vm384_vm1, %v383_v18 }
 0x20d   : > { %v953_v21 = vpop.f32.mrb[0].mxu0 }
 0x20e   : > { %v583_v22 = vmax.f32 %v953_v21, 0.0  ;;  %v503_v23 = vpop.f32.mrb[1].mxu0 }
 0x20f   : > { %v582_v24 = vmax.f32 %v503_v23, 0.0 }
 0x210   : > { %v599_v25 = vmul.f32 %v583_v22, %v583_v22 }
 0x211   : > { %v598_v26 = vmul.f32 %v582_v24, %v582_v24 }
 0x213   : > { %v1011_v27 = vpack.c.bf16 %v599_v25, %v598_v26 }
 0x215   : > { %v956_v28 = vpop.f32.mrb[2].mxu0  ;;  %1012 = vmatpush3.bf16.xpose.msra.mxu1 %v1011_v27 }
 0x216   : > { %v585_v29 = vmax.f32 %v956_v28, 0.0  ;;  %v513_v30 = vpop.f32.mrb[3].mxu0  ;;  %1013 = vmatprep.subr.bf16.mxu1 %v1404_v19 }
 0x217   : > { %v584_v31 = vmax.f32 %v513_v30, 0.0 }
 0x218   : > { %v601_v32 = vmul.f32 %v585_v29, %v585_v29 }
 0x219   : > { %v600_v33 = vmul.f32 %v584_v31, %v584_v31 }
 0x21b   : > { %v1014_v34 = vpack.c.bf16 %v601_v32, %v600_v33 }
 0x21d   : > { %v959_v35 = vpop.f32.mrb[4].mxu0  ;;  %1015 = vmatpush3.bf16.xpose.msra.mxu1 %v1014_v34 }
 0x21e   : > { %v587_v36 = vmax.f32 %v959_v35, 0.0  ;;  %v523_v37 = vpop.f32.mrb[5].mxu0  ;;  %1016 = vmatprep.subr.bf16.mxu1 %v1404_v19 }
 0x21f   : > { %v586_v38 = vmax.f32 %v523_v37, 0.0 }
 0x220   : > { %v603_v39 = vmul.f32 %v587_v36, %v587_v36 }
 0x221   : > { %v602_v40 = vmul.f32 %v586_v38, %v586_v38 }
 0x223   : > { %v1017_v41 = vpack.c.bf16 %v603_v39, %v602_v40 }
 0x225   : > { %v962_v42 = vpop.f32.mrb[6].mxu0  ;;  %1018 = vmatpush3.bf16.xpose.msra.mxu1 %v1017_v41 }
 0x226   : > { %v589_v43 = vmax.f32 %v962_v42, 0.0  ;;  %v533_v44 = vpop.f32.mrb[7].mxu0  ;;  %1019 = vmatprep.subr.bf16.mxu1 %v1404_v19 }
 0x227   : > { %v588_v45 = vmax.f32 %v533_v44, 0.0 }
 0x228   : > { %v605_v46 = vmul.f32 %v589_v43, %v589_v43 }
 0x229   : > { %v604_v47 = vmul.f32 %v588_v45, %v588_v45 }
 0x22b   : > { %v1020_v48 = vpack.c.bf16 %v605_v46, %v604_v47 }
 0x22d   : > { %v965_v49 = vpop.f32.mrb[8].mxu0  ;;  %1021 = vmatpush3.bf16.xpose.msra.mxu1 %v1020_v48 }
 0x22e   : > { %v591_v50 = vmax.f32 %v965_v49, 0.0  ;;  %v543_v51 = vpop.f32.mrb[9].mxu0  ;;  %1022 = vmatprep.subr.bf16.mxu1 %v1404_v19 }
 0x22f   : > { %v590_v52 = vmax.f32 %v543_v51, 0.0 }
 0x230   : > { %v607_v53 = vmul.f32 %v591_v50, %v591_v50 }
 0x231   : > { %v606_v54 = vmul.f32 %v590_v52, %v590_v52 }
 0x233   : > { %v1023_v55 = vpack.c.bf16 %v607_v53, %v606_v54 }
 0x235   : > { %v968_v56 = vpop.f32.mrb[10].mxu0  ;;  %1024 = vmatpush3.bf16.xpose.msra.mxu1 %v1023_v55 }
 0x236   : > { %v593_v57 = vmax.f32 %v968_v56, 0.0  ;;  %v553_v58 = vpop.f32.mrb[11].mxu0  ;;  %1025 = vmatprep.subr.bf16.mxu1 %v1404_v19 }
 0x237   : > { %v592_v59 = vmax.f32 %v553_v58, 0.0 }
 0x238   : > { %v609_v60 = vmul.f32 %v593_v57, %v593_v57 }
 0x239   : > { %v608_v61 = vmul.f32 %v592_v59, %v592_v59 }
 0x23b   : > { %v1026_v62 = vpack.c.bf16 %v609_v60, %v608_v61 }
 0x23d   : > { %v971_v63 = vpop.f32.mrb[12].mxu0  ;;  %1027 = vmatpush3.bf16.xpose.msra.mxu1 %v1026_v62 }
 0x23e   : > { %v595_v0 = vmax.f32 %v971_v63, 0.0  ;;  %v563_v1 = vpop.f32.mrb[13].mxu0  ;;  %1028 = vmatprep.subr.bf16.mxu1 %v1404_v19 }
 0x23f   : > { %v594_v2 = vmax.f32 %v563_v1, 0.0 }
 0x240   : > { %v611_v3 = vmul.f32 %v595_v0, %v595_v0 }
 0x241   : > { %v610_v4 = vmul.f32 %v594_v2, %v594_v2 }
 0x243   : > { %v1029_v5 = vpack.c.bf16 %v611_v3, %v610_v4 }
 0x245   : > { %v974_v6 = vpop.f32.mrb[14].mxu0  ;;  %1030 = vmatpush3.bf16.xpose.msra.mxu1 %v1029_v5 }
 0x246   : > { %v597_v7 = vmax.f32 %v974_v6, 0.0  ;;  %v573_v8 = vpop.f32.mrb[15].mxu0  ;;  %1031 = vmatprep.subr.bf16.mxu1 %v1404_v19  ;;  %v909_v19 = vld [vmem:[%s344_s30] ss:$0 sm:$0xff] (!%p908_p3) }
 0x247   : > { %v596_v9 = vmax.f32 %v573_v8, 0.0 }
 0x248   : > { %v613_v10 = vmul.f32 %v597_v7, %v597_v7 }
 0x249   : > { %v612_v11 = vmul.f32 %v596_v9, %v596_v9 }
 0x24b   : > { %v1032_v12 = vpack.c.bf16 %v613_v10, %v612_v11 }
 0x24d   : > { %1033 = vmatpush3.bf16.xpose.msra.mxu1 %v1032_v12 }
 0x254   : > { %1008 = vmatmul.mubr.f32.vlgmr.msra.gmra.mrb[0].mxu1 %v615_v13 }
 0x324   : > { %691 = sbr.rel (%p908_p3) target bundleno = 821 (0x335), region = 56 }
 0x327   : > { %v682_v15 = vpop.f32.mrb[0].mxu1 }
 0x328   : > { %v686_v16 = vadd.f32 %v682_v15, %v614_v14  ;;  %v1009_v17 = vpop.f32.mrb[1].mxu1 }
 0x32a   : > { %687 = vst [vmem:[#allocation2] sm:$0xf] %v686_v16 }
 0x331   : > { %v692_v18 = vld [vmem:[#allocation2] sm:$0xf] }
 0x332   : > { %v700_v20 = vmul.f32 %v909_v19, %v692_v18 }
 0x334   : > { %701 = vst [vmem:[%s1757_s18] sm:$0xf] %v700_v20 }
 0x335 PF: > { %s1959_s19 = sld [smem:[#allocation18_spill]]  ;;  %s1960_s22 = sld [smem:[#allocation17_spill]] }
 0x336   : > { %s1961_s15 = sld [smem:[#allocation26_spill]]  ;;  %s718_s11 = sshll.u32 %s1757_s18, 4  ;;  %s1796_s11 = int_to_ptr.vmem [resolvable:$true] %s718_s11 }
 0x337   : > { %s1962_s5 = sld [smem:[#allocation31_spill]]  ;;  %s703_s30 = scalar_lea.sflag [#allocation5], %s1729_s7 }
 0x338   : > { %s1256_s14 = scalar_lea.vmem %s1796_s11, 64  ;;  %s1407_s21 = smov [#allocation9]  }
 0x339   : > { %p1257_p10 = scmp.ne.s32.totalorder %s1796_s11, %s1256_s14  ;;  %s1260_s3 = sshll.u32 %s1407_s21, 4  ;;  %s1261_s3 = int_to_ptr.vmem [resolvable:$false] %s1260_s3 }
 0x33a   : > { %s1262_s18 = scalar_lea.vmem %s1261_s3, 128  ;;  %p1263_p12 = scmp.lt.s32.totalorder %s1796_s11, %s1261_s3 }
 0x33b   : > { %s911_s1 = sshll.u32 %s1959_s19, 1  ;;  %p1264_p6 = scmp.lt.s32.totalorder %s1262_s18, %s1256_s14 }
 0x33c   : > { %s714_s6 = sadd.s32 %s1960_s22, %s911_s1  ;;  %p1963_p11 = scmp.ne.s32.totalorder %s1961_s15, 0 }
 0x33d   : > { %s912_s9 = sshll.u32 %s714_s6, 6  ;;  %p1265_p4 = por %p1264_p6, %p1263_p12 }
 0x33e   : > { %s716_s12 = scalar_lea.hbm %s1962_s5, %s912_s9  ;;  %p1258_p1 = pnand %p1257_p10, %p1963_p11 }
 0x340   : > { %p1259_p13 = pneg %p1258_p1 }
 0x342   : > { %p1266_p2 = pnand %p1265_p4, %p1259_p13 }
 0x344   : > { %1269 = shalt.err (!%p1266_p2)
}
 0x345   : > { %s1270_s28 = scalar_lea.hbm %s716_s12, 64  ;;  %s1274_s8 = scalar_lea.hbm %s1962_s5, 256 }
 0x346   : > { %p1271_p5 = scmp.ne.s32.totalorder %s716_s12, %s1270_s28  ;;  %p1275_p7 = scmp.lt.u32.totalorder %s716_s12, %s1962_s5 }
 0x347   : > { %p1276_p9 = scmp.lt.u32.totalorder %s1274_s8, %s1270_s28  ;;  %p1278_p10 = scmp.lt.u32.totalorder %s1270_s28, %s716_s12 }
 0x348   : > { %p1272_p8 = pnand %p1271_p5, %p1963_p11 }
 0x349   : > { %p1277_p3 = por %p1276_p9, %p1275_p7 }
 0x34a   : > { %p1273_p0 = pneg %p1272_p8 }
 0x34b   : > { %p1279_p1 = por %p1278_p10, %p1277_p3 }
 0x34d   : > { %p1280_p13 = pnand %p1279_p1, %p1273_p0 }
 0x34f   : > { %1283 = shalt.err (!%p1280_p13)
}
 0x350   : > { %1040 = dma.vmem_to_hbm [thread:$0]  (%p1963_p11), %s1796_s11, 64, %s716_s12, %s703_s30  }
 0x351 PF: > { %s1964_s1 = sld [smem:[#allocation14_spill]]  ;;  %s1965_s6 = sld [smem:[#allocation28_spill]] }
 0x352   : > { %p1057_p12 = scmp.ge.s32.totalorder %s1398_s27, 2 }
 0x357   : > { %s730_s9 = sand.u32 1, %s1964_s1   ;;  %p1966_p6 = scmp.ne.s32.totalorder %s1965_s6, 0 }
 0x358   : > { %s731_s13 = scalar_lea.sflag [#allocation5], %s730_s9 }
 0x359   : > { %p1053_p4 = pnand %p1057_p12, %p1966_p6 }
 0x35b   : > { %1345 = dma.done.wait (!%p1053_p4), %s731_s13, 64  }
 0x35c   : > { %1347 = vsyncadd (!%p1053_p4), %s731_s13, 4294967232  ;;  %s23_s27 = sadd.s32 1, %s1398_s27   ;;  %s1968_s15 = sld [smem:[#allocation13_spill]] }
 0x35d   : > { %p1823_p2 = scmp.ge.s32.totalorder %s23_s27, 10   ;;  %s1969_s18 = sld [smem:[#allocation15_spill]] }
 0x35e   : > { %s1970_s11 = smov %s1645_s16  ;;  %s1971_s12 = sld [smem:[#allocation24_spill]] }
 0x35f   : > { %s1972_s30 = sld [smem:[#allocation27_spill]]  ;;  %s1973_s16 = smov %s1358_s17 }
 0x360   : > { %s1974_s17 = smov %s1650_s4  ;;  %s1975_s19 = smov %s1370_s20 }
 0x361   : > { %s1976_s20 = smov %s1970_s11  ;;  %s1977_s21 = smov %s1386_s24 }
 0x362   : > { %s1978_s22 = smov %s1390_s25  ;;  %s1979_s23 = smov %s1394_s26 }
 0x363   : > { %s1980_s24 = smov %s1984_s29  ;;  %22 = sbr.rel (!%p1823_p2) target bundleno = 16 (0x10), region = 116 }
 0x364   : > { %s1981_s25 = smov %s1971_s12 }
 0x365   : > { %s1982_s26 = smov %s1972_s30 }
 0x36a   :  { %736 = vsyncpa [#allocation4], 1 }
 0x36b   :  { %738 = vsyncpa [#allocation4 + $0x1], 1 }
 0x36c   :  { %739 = vsyncpa [#allocation7], 1 }
 0x36d   :  { %741 = vsyncpa [#allocation7 + $0x1], 1 }
 0x36e   :  { %742 = vsyncpa [#allocation5], 1 }
 0x36f   :  { %744 = vsyncpa [#allocation5 + $0x1], 1 }

</bundles_post_ra>
